<compile_context>
chip_gen: v5e
topology: v5e:2x2
jax: 0.10.0
libtpu: 0.0.40
codegen_flags: <defaults>
</compile_context>

<pallas_src>
import numpy as np
import jax
import jax.numpy as jnp
from jax.experimental import pallas as pl
from jax.experimental.pallas import tpu as pltpu

N_QUBITS = 4
N_LAYERS = 3
DIM = 1 << N_QUBITS          # 16
PACK = 2                     # batch groups stacked on the sublane axis
LANE_TILE_MAX = 8192         # lanes per grid step; ~8 MiB live VMEM -> fits v5e/v6e/v7x


# ----------------------------------------------------------------------------
# Host-side glue: build circuit constants (entangler unitary, tables) once.
# ----------------------------------------------------------------------------
def _rx(theta):
    c = np.cos(theta / 2.0)
    s = np.sin(theta / 2.0)
    return np.array([[c, -1j * s], [-1j * s, c]], dtype=np.complex128)


def _single_qubit_full(gate, wire, n):
    # PennyLane convention: wire 0 is the most significant bit.
    m = np.array([[1.0]], dtype=np.complex128)
    for q in range(n):
        m = np.kron(m, gate if q == wire else np.eye(2, dtype=np.complex128))
    return m


def _cnot_full(control, target, n):
    dim = 1 << n
    m = np.zeros((dim, dim), dtype=np.complex128)
    for b in range(dim):
        if (b >> (n - 1 - control)) & 1:
            b2 = b ^ (1 << (n - 1 - target))
        else:
            b2 = b
        m[b2, b] = 1.0
    return m


def _entangler_unitary(weights, n):
    # BasicEntanglerLayers: per layer, RX(weights[l, q]) on each wire, then a
    # CNOT ring (q -> q+1 mod n).
    dim = 1 << n
    U = np.eye(dim, dtype=np.complex128)
    for l in range(weights.shape[0]):
        for q in range(n):
            U = _single_qubit_full(_rx(weights[l, q]), q, n) @ U
        if n == 2:
            U = _cnot_full(0, 1, n) @ U
        else:
            for q in range(n):
                U = _cnot_full(q, (q + 1) % n, n) @ U
    return U


def _build_constants(weights_f64):
    n, dim = N_QUBITS, DIM
    # Fold the AngleEmbedding phase (-i)^popcount(b) into the entangler:
    # |psi> = U_ent @ (diag(phase) @ mag) = V @ mag, with mag real.
    phase = np.array([(-1j) ** bin(b).count("1") for b in range(dim)],
                     dtype=np.complex128)
    U = _entangler_unitary(weights_f64, n)
    V = U @ np.diag(phase)
    W = np.concatenate([V.real, V.imag], axis=0).astype(np.float32)   # (32, 16)

    # Block-diag duplicate for the two sublane-packed batch groups -> (64, 32).
    W2 = np.zeros((2 * PACK * dim, PACK * dim), dtype=np.float32)
    W2[:2 * dim, :dim] = W
    W2[2 * dim:, dim:] = W

    # Z-sign table fused with the Re^2 + Im^2 sum: zs2 = [zs, zs]  (4, 32),
    # block-diag duplicated for the two packed groups -> (8, 64).
    signs = np.array([[1.0 - 2.0 * ((b >> (n - 1 - q)) & 1) for b in range(dim)]
                      for q in range(n)], dtype=np.float32)           # (4, 16)
    zs2 = np.concatenate([signs, signs], axis=1)                      # (4, 32)
    Z2 = np.zeros((PACK * n, 2 * PACK * dim), dtype=np.float32)       # (8, 64)
    Z2[:n, :2 * dim] = zs2
    Z2[n:, 2 * dim:] = zs2
    return W2, Z2


_CONST_CACHE = {}


def _get_constants(weights_np):
    w = np.asarray(weights_np, dtype=np.float64)
    key = (w.shape, w.tobytes())
    if key not in _CONST_CACHE:
        W2, Z2 = _build_constants(w)
        _CONST_CACHE[key] = (jnp.asarray(W2), jnp.asarray(Z2))
    return _CONST_CACHE[key]


# ----------------------------------------------------------------------------
# Pallas kernel: lane-dense, sublane-packed statevector push-through + readout.
# ----------------------------------------------------------------------------
def quantum_layer_kernel(x_ref, w_ref, zs_ref, out_ref):
    x = x_ref[...]                                    # (8, T): 2 groups x 4 angles
    c = jnp.cos(0.5 * x)                              # (8, T) full-vreg EUP/VPU work
    s = jnp.sin(0.5 * x)                              # (8, T)
    T = x.shape[1]

    # Basis-state bit table generated in-register (wire 0 = MSB).
    row = jax.lax.broadcasted_iota(jnp.int32, (DIM, 1), 0)            # (16, 1)

    # Separable-state magnitude per group, one vsel + one mul per qubit.
    magA = None
    magB = None
    for q in range(N_QUBITS):
        bit = jnp.broadcast_to(((row >> (N_QUBITS - 1 - q)) & 1) != 0,
                               (DIM, T))                              # (16, T) mask
        fA = jnp.where(bit, s[q:q + 1, :], c[q:q + 1, :])             # (16, T)
        fB = jnp.where(bit, s[q + N_QUBITS:q + N_QUBITS + 1, :],
                       c[q + N_QUBITS:q + N_QUBITS + 1, :])           # (16, T)
        if q == 0:
            magA, magB = fA, fB
        else:
            magA = magA * fA
            magB = magB * fB
    mag = jnp.concatenate([magA, magB], axis=0)                       # (32, T)

    # psi (both groups) = block_diag(V, V) @ mag -> one real MXU matmul.
    res = jnp.dot(w_ref[...], mag,
                  preferred_element_type=jnp.float32,
                  precision=jax.lax.Precision.HIGHEST)                # (64, T)

    # Fused |Re|^2 + |Im|^2 and Pauli-Z readout: out = Z2 @ (res * res).
    out_ref[...] = jnp.dot(zs_ref[...], res * res,
                           preferred_element_type=jnp.float32,
                           precision=jax.lax.Precision.HIGHEST)       # (8, T)


def _round_up(v, m):
    return ((v + m - 1) // m) * m


def _choose_tiles(batch):
    half = (batch + 1) // 2                 # samples per sublane group
    if half <= 1024:
        lane_tile = max(128, _round_up(half, 128))
        steps = 1
    else:
        # Aim for >= 2 grid steps (v7x dual TensorCore), lane tiles <= 8192.
        lane_tile = min(LANE_TILE_MAX, _round_up((half + 1) // 2, 512))
        steps = (half + lane_tile - 1) // lane_tile
    return lane_tile, steps


def quantum_layer_forward(x, weights_np):
    """x: (B, n_qubits) float32 -> (B, n_qubits) float32 Pauli-Z expvals."""
    x = jnp.asarray(x, jnp.float32)
    B = x.shape[0]

    T, G = _choose_tiles(B)
    TB2 = G * T                              # lanes per packed group
    total = PACK * TB2                       # padded batch

    # Zero-pad (zero angle -> cos=1, sin=0: harmless, sliced off) and pack two
    # batch halves on the sublane axis: x_packed[g*4 + q, t] = x[g*TB2 + t, q].
    x_pad = jnp.zeros((total, N_QUBITS), jnp.float32).at[:B, :].set(x)
    x_packed = jnp.transpose(x_pad.reshape(PACK, TB2, N_QUBITS),
                             (0, 2, 1)).reshape(PACK * N_QUBITS, TB2)

    W2, Z2 = _get_constants(weights_np)

    out_packed = pl.pallas_call(
        quantum_layer_kernel,
        out_shape=jax.ShapeDtypeStruct((PACK * N_QUBITS, TB2), jnp.float32),
        grid=(G,),
        in_specs=[
            pl.BlockSpec((PACK * N_QUBITS, T), lambda i: (0, i)),     # batch tile
            pl.BlockSpec((2 * PACK * DIM, PACK * DIM), lambda i: (0, 0)),  # resident
            pl.BlockSpec((PACK * N_QUBITS, 2 * PACK * DIM), lambda i: (0, 0)),
        ],
        out_specs=pl.BlockSpec((PACK * N_QUBITS, T), lambda i: (0, i)),
        compiler_params=pltpu.CompilerParams(
            dimension_semantics=("parallel",)),
    )(x_packed, W2, Z2)

    out = jnp.transpose(out_packed.reshape(PACK, N_QUBITS, TB2),
                        (0, 2, 1)).reshape(total, N_QUBITS)
    return out[:B]


# ----------------------------------------------------------------------------
# Independent numpy reference: full statevector simulation of the same circuit.
# ----------------------------------------------------------------------------
def reference_forward(x_np, weights_np):
    n, dim = N_QUBITS, DIM
    U_ent = _entangler_unitary(np.asarray(weights_np, dtype=np.float64), n)
    outs = []
    for sample in x_np:
        psi = np.zeros((dim,), dtype=np.complex128)
        psi[0] = 1.0
        for q in range(n):  # AngleEmbedding with RX
            psi = _single_qubit_full(_rx(float(sample[q])), q, n) @ psi
        psi = U_ent @ psi
        probs = np.abs(psi) ** 2
        ev = []
        for q in range(n):
            signs = np.array([1.0 - 2.0 * ((b >> (n - 1 - q)) & 1)
                              for b in range(dim)], dtype=np.float64)
            ev.append(float(np.dot(probs, signs)))
        outs.append(ev)
    return np.array(outs, dtype=np.float32)


if __name__ == "__main__":
    key = jax.random.PRNGKey(0)
    k_x, k_w = jax.random.split(key)

    # small deterministic inputs: batch=2, features = n_qubits = 4
    x = jax.random.normal(k_x, (2, N_QUBITS), dtype=jnp.float32)
    # TorchLayer default init: uniform(0, 2*pi) with weight_shapes (L, n_qubits)
    weights = np.asarray(
        jax.random.uniform(k_w, (N_LAYERS, N_QUBITS), dtype=jnp.float32)
        * (2.0 * np.pi))

    out = quantum_layer_forward(x, weights)
    out = jax.block_until_ready(out)

    ref = reference_forward(np.asarray(x), weights)
    np.testing.assert_allclose(np.asarray(out), ref, atol=1e-3, rtol=1e-3)

    print("KERNEL_OK")
</pallas_src>

<mosaic_0001>
module attributes {stable_mosaic.version = 11 : i64} {
  func.func @quantum_layer_kernel(%arg0: i32, %arg1: memref<8x128xf32, #tpu.memory_space<vmem>>, %arg2: memref<64x32xf32, #tpu.memory_space<vmem>>, %arg3: memref<8x64xf32, #tpu.memory_space<vmem>>, %arg4: memref<8x128xf32, #tpu.memory_space<vmem>>) attributes {dimension_semantics = [#tpu.dimension_semantics<parallel>], iteration_bounds = array<i64: 1>, scalar_prefetch = 0 : i64, scratch_operands = 0 : i64, tpu.core_type = #tpu.core_type<tc>, window_params = [{transform_indices = @transform_0, window_bounds = array<i64: 8, 128>}, {pipeline_mode = #tpu.pipeline_mode<synchronous>, transform_indices = @transform_1, window_bounds = array<i64: 64, 32>}, {pipeline_mode = #tpu.pipeline_mode<synchronous>, transform_indices = @transform_2, window_bounds = array<i64: 8, 64>}, {transform_indices = @transform_3, window_bounds = array<i64: 8, 128>}]} {
    %c0 = arith.constant 0 : index
    %c0_0 = arith.constant 0 : index
    %0 = vector.load %arg1[%c0, %c0_0] : memref<8x128xf32, #tpu.memory_space<vmem>>, vector<8x128xf32>
    %cst = arith.constant 5.000000e-01 : f32
    %1 = vector.broadcast %cst : f32 to vector<8x128xf32>
    %2 = arith.mulf %1, %0 : vector<8x128xf32>
    %3 = math.cos %2 : vector<8x128xf32>
    %cst_1 = arith.constant 5.000000e-01 : f32
    %4 = vector.broadcast %cst_1 : f32 to vector<8x128xf32>
    %5 = arith.mulf %4, %0 : vector<8x128xf32>
    %6 = math.sin %5 : vector<8x128xf32>
    %7 = tpu.iota {dimensions = array<i32: 0>} : vector<16x1xi32>
    %c3_i32 = arith.constant 3 : i32
    %8 = vector.broadcast %c3_i32 : i32 to vector<16x1xi32>
    %9 = arith.shrsi %7, %8 : vector<16x1xi32>
    %c1_i32 = arith.constant 1 : i32
    %10 = vector.broadcast %c1_i32 : i32 to vector<16x1xi32>
    %11 = arith.andi %9, %10 : vector<16x1xi32>
    %c0_i32 = arith.constant 0 : i32
    %12 = vector.broadcast %c0_i32 : i32 to vector<16x1xi32>
    %13 = arith.cmpi ne, %11, %12 : vector<16x1xi32>
    %14 = vector.shape_cast %13 : vector<16x1xi1> to vector<16x1xi1>
    %15 = vector.broadcast %14 : vector<16x1xi1> to vector<16x128xi1>
    %16 = vector.extract_strided_slice %6 {offsets = [0, 0], sizes = [1, 128], strides = [1, 1]} : vector<8x128xf32> to vector<1x128xf32>
    %17 = vector.extract_strided_slice %3 {offsets = [0, 0], sizes = [1, 128], strides = [1, 1]} : vector<8x128xf32> to vector<1x128xf32>
    %18 = vector.shape_cast %16 : vector<1x128xf32> to vector<1x128xf32>
    %19 = vector.broadcast %18 : vector<1x128xf32> to vector<16x128xf32>
    %20 = vector.shape_cast %17 : vector<1x128xf32> to vector<1x128xf32>
    %21 = vector.broadcast %20 : vector<1x128xf32> to vector<16x128xf32>
    %22 = arith.select %15, %19, %21 : vector<16x128xi1>, vector<16x128xf32>
    %23 = vector.extract_strided_slice %6 {offsets = [4, 0], sizes = [1, 128], strides = [1, 1]} : vector<8x128xf32> to vector<1x128xf32>
    %24 = vector.extract_strided_slice %3 {offsets = [4, 0], sizes = [1, 128], strides = [1, 1]} : vector<8x128xf32> to vector<1x128xf32>
    %25 = vector.shape_cast %23 : vector<1x128xf32> to vector<1x128xf32>
    %26 = vector.broadcast %25 : vector<1x128xf32> to vector<16x128xf32>
    %27 = vector.shape_cast %24 : vector<1x128xf32> to vector<1x128xf32>
    %28 = vector.broadcast %27 : vector<1x128xf32> to vector<16x128xf32>
    %29 = arith.select %15, %26, %28 : vector<16x128xi1>, vector<16x128xf32>
    %c2_i32 = arith.constant 2 : i32
    %30 = vector.broadcast %c2_i32 : i32 to vector<16x1xi32>
    %31 = arith.shrsi %7, %30 : vector<16x1xi32>
    %c1_i32_2 = arith.constant 1 : i32
    %32 = vector.broadcast %c1_i32_2 : i32 to vector<16x1xi32>
    %33 = arith.andi %31, %32 : vector<16x1xi32>
    %c0_i32_3 = arith.constant 0 : i32
    %34 = vector.broadcast %c0_i32_3 : i32 to vector<16x1xi32>
    %35 = arith.cmpi ne, %33, %34 : vector<16x1xi32>
    %36 = vector.shape_cast %35 : vector<16x1xi1> to vector<16x1xi1>
    %37 = vector.broadcast %36 : vector<16x1xi1> to vector<16x128xi1>
    %38 = vector.extract_strided_slice %6 {offsets = [1, 0], sizes = [1, 128], strides = [1, 1]} : vector<8x128xf32> to vector<1x128xf32>
    %39 = vector.extract_strided_slice %3 {offsets = [1, 0], sizes = [1, 128], strides = [1, 1]} : vector<8x128xf32> to vector<1x128xf32>
    %40 = vector.shape_cast %38 : vector<1x128xf32> to vector<1x128xf32>
    %41 = vector.broadcast %40 : vector<1x128xf32> to vector<16x128xf32>
    %42 = vector.shape_cast %39 : vector<1x128xf32> to vector<1x128xf32>
    %43 = vector.broadcast %42 : vector<1x128xf32> to vector<16x128xf32>
    %44 = arith.select %37, %41, %43 : vector<16x128xi1>, vector<16x128xf32>
    %45 = vector.extract_strided_slice %6 {offsets = [5, 0], sizes = [1, 128], strides = [1, 1]} : vector<8x128xf32> to vector<1x128xf32>
    %46 = vector.extract_strided_slice %3 {offsets = [5, 0], sizes = [1, 128], strides = [1, 1]} : vector<8x128xf32> to vector<1x128xf32>
    %47 = vector.shape_cast %45 : vector<1x128xf32> to vector<1x128xf32>
    %48 = vector.broadcast %47 : vector<1x128xf32> to vector<16x128xf32>
    %49 = vector.shape_cast %46 : vector<1x128xf32> to vector<1x128xf32>
    %50 = vector.broadcast %49 : vector<1x128xf32> to vector<16x128xf32>
    %51 = arith.select %37, %48, %50 : vector<16x128xi1>, vector<16x128xf32>
    %52 = arith.mulf %22, %44 : vector<16x128xf32>
    %53 = arith.mulf %29, %51 : vector<16x128xf32>
    %c1_i32_4 = arith.constant 1 : i32
    %54 = vector.broadcast %c1_i32_4 : i32 to vector<16x1xi32>
    %55 = arith.shrsi %7, %54 : vector<16x1xi32>
    %c1_i32_5 = arith.constant 1 : i32
    %56 = vector.broadcast %c1_i32_5 : i32 to vector<16x1xi32>
    %57 = arith.andi %55, %56 : vector<16x1xi32>
    %c0_i32_6 = arith.constant 0 : i32
    %58 = vector.broadcast %c0_i32_6 : i32 to vector<16x1xi32>
    %59 = arith.cmpi ne, %57, %58 : vector<16x1xi32>
    %60 = vector.shape_cast %59 : vector<16x1xi1> to vector<16x1xi1>
    %61 = vector.broadcast %60 : vector<16x1xi1> to vector<16x128xi1>
    %62 = vector.extract_strided_slice %6 {offsets = [2, 0], sizes = [1, 128], strides = [1, 1]} : vector<8x128xf32> to vector<1x128xf32>
    %63 = vector.extract_strided_slice %3 {offsets = [2, 0], sizes = [1, 128], strides = [1, 1]} : vector<8x128xf32> to vector<1x128xf32>
    %64 = vector.shape_cast %62 : vector<1x128xf32> to vector<1x128xf32>
    %65 = vector.broadcast %64 : vector<1x128xf32> to vector<16x128xf32>
    %66 = vector.shape_cast %63 : vector<1x128xf32> to vector<1x128xf32>
    %67 = vector.broadcast %66 : vector<1x128xf32> to vector<16x128xf32>
    %68 = arith.select %61, %65, %67 : vector<16x128xi1>, vector<16x128xf32>
    %69 = vector.extract_strided_slice %6 {offsets = [6, 0], sizes = [1, 128], strides = [1, 1]} : vector<8x128xf32> to vector<1x128xf32>
    %70 = vector.extract_strided_slice %3 {offsets = [6, 0], sizes = [1, 128], strides = [1, 1]} : vector<8x128xf32> to vector<1x128xf32>
    %71 = vector.shape_cast %69 : vector<1x128xf32> to vector<1x128xf32>
    %72 = vector.broadcast %71 : vector<1x128xf32> to vector<16x128xf32>
    %73 = vector.shape_cast %70 : vector<1x128xf32> to vector<1x128xf32>
    %74 = vector.broadcast %73 : vector<1x128xf32> to vector<16x128xf32>
    %75 = arith.select %61, %72, %74 : vector<16x128xi1>, vector<16x128xf32>
    %76 = arith.mulf %52, %68 : vector<16x128xf32>
    %77 = arith.mulf %53, %75 : vector<16x128xf32>
    %c0_i32_7 = arith.constant 0 : i32
    %78 = vector.broadcast %c0_i32_7 : i32 to vector<16x1xi32>
    %79 = arith.shrsi %7, %78 : vector<16x1xi32>
    %c1_i32_8 = arith.constant 1 : i32
    %80 = vector.broadcast %c1_i32_8 : i32 to vector<16x1xi32>
    %81 = arith.andi %79, %80 : vector<16x1xi32>
    %c0_i32_9 = arith.constant 0 : i32
    %82 = vector.broadcast %c0_i32_9 : i32 to vector<16x1xi32>
    %83 = arith.cmpi ne, %81, %82 : vector<16x1xi32>
    %84 = vector.shape_cast %83 : vector<16x1xi1> to vector<16x1xi1>
    %85 = vector.broadcast %84 : vector<16x1xi1> to vector<16x128xi1>
    %86 = vector.extract_strided_slice %6 {offsets = [3, 0], sizes = [1, 128], strides = [1, 1]} : vector<8x128xf32> to vector<1x128xf32>
    %87 = vector.extract_strided_slice %3 {offsets = [3, 0], sizes = [1, 128], strides = [1, 1]} : vector<8x128xf32> to vector<1x128xf32>
    %88 = vector.shape_cast %86 : vector<1x128xf32> to vector<1x128xf32>
    %89 = vector.broadcast %88 : vector<1x128xf32> to vector<16x128xf32>
    %90 = vector.shape_cast %87 : vector<1x128xf32> to vector<1x128xf32>
    %91 = vector.broadcast %90 : vector<1x128xf32> to vector<16x128xf32>
    %92 = arith.select %85, %89, %91 : vector<16x128xi1>, vector<16x128xf32>
    %93 = vector.extract_strided_slice %6 {offsets = [7, 0], sizes = [1, 128], strides = [1, 1]} : vector<8x128xf32> to vector<1x128xf32>
    %94 = vector.extract_strided_slice %3 {offsets = [7, 0], sizes = [1, 128], strides = [1, 1]} : vector<8x128xf32> to vector<1x128xf32>
    %95 = vector.shape_cast %93 : vector<1x128xf32> to vector<1x128xf32>
    %96 = vector.broadcast %95 : vector<1x128xf32> to vector<16x128xf32>
    %97 = vector.shape_cast %94 : vector<1x128xf32> to vector<1x128xf32>
    %98 = vector.broadcast %97 : vector<1x128xf32> to vector<16x128xf32>
    %99 = arith.select %85, %96, %98 : vector<16x128xi1>, vector<16x128xf32>
    %100 = arith.mulf %76, %92 : vector<16x128xf32>
    %101 = arith.mulf %77, %99 : vector<16x128xf32>
    %102 = tpu.concatenate %100, %101 in 0 : vector<16x128xf32>, vector<16x128xf32> -> vector<32x128xf32>
    %c0_10 = arith.constant 0 : index
    %c0_11 = arith.constant 0 : index
    %103 = vector.load %arg2[%c0_10, %c0_11] : memref<64x32xf32, #tpu.memory_space<vmem>>, vector<64x32xf32>
    %cst_12 = arith.constant dense<0.000000e+00> : vector<64x128xf32>
    %104 = tpu.matmul %103, %102, %cst_12 {dimension_numbers = #tpu.dot_dimension_numbers<[1], [0], [0], [1], [0, 0, 1, 1], [], []>, precision = #tpu.contract_precision<fp32>} : vector<64x32xf32>, vector<32x128xf32>, vector<64x128xf32> -> vector<64x128xf32>
    %c0_13 = arith.constant 0 : index
    %c0_14 = arith.constant 0 : index
    %105 = vector.load %arg3[%c0_13, %c0_14] : memref<8x64xf32, #tpu.memory_space<vmem>>, vector<8x64xf32>
    %106 = arith.mulf %104, %104 : vector<64x128xf32>
    %cst_15 = arith.constant dense<0.000000e+00> : vector<8x128xf32>
    %107 = tpu.matmul %105, %106, %cst_15 {dimension_numbers = #tpu.dot_dimension_numbers<[1], [0], [0], [1], [0, 0, 1, 1], [], []>, precision = #tpu.contract_precision<fp32>} : vector<8x64xf32>, vector<64x128xf32>, vector<8x128xf32> -> vector<8x128xf32>
    %c0_16 = arith.constant 0 : index
    %c0_17 = arith.constant 0 : index
    %108 = vector.load %arg4[%c0_16, %c0_17] : memref<8x128xf32, #tpu.memory_space<vmem>>, vector<8x128xf32>
    tpu.vector_store %arg4[%c0_16, %c0_17], %107 {strides = array<i32>} : memref<8x128xf32, #tpu.memory_space<vmem>>, vector<8x128xf32>,
    return
  }
  func.func @transform_0(%arg0: i32) -> (i32, i32) {
    %c0_i32 = arith.constant 0 : i32
    %c0_i32_0 = arith.constant 0 : i32
    return %c0_i32, %arg0 : i32, i32
  }
  func.func @transform_1(%arg0: i32) -> (i32, i32) {
    %c0_i32 = arith.constant 0 : i32
    %c0_i32_0 = arith.constant 0 : i32
    %c0_i32_1 = arith.constant 0 : i32
    return %c0_i32, %c0_i32_0 : i32, i32
  }
  func.func @transform_2(%arg0: i32) -> (i32, i32) {
    %c0_i32 = arith.constant 0 : i32
    %c0_i32_0 = arith.constant 0 : i32
    %c0_i32_1 = arith.constant 0 : i32
    return %c0_i32, %c0_i32_0 : i32, i32
  }
  func.func @transform_3(%arg0: i32) -> (i32, i32) {
    %c0_i32 = arith.constant 0 : i32
    %c0_i32_0 = arith.constant 0 : i32
    return %c0_i32, %arg0 : i32, i32
  }
}

</mosaic_0001>

<bundles_post_ra>
// kernel: tpu_custom_call.1
= control target key start
LH: loop header
LB: loop body
LE: loop exit
PB: predicated region body
PF: predicated region fallthrough
CT: control target
= control target key end

     0   :  { %s1549_s0 = inlined_call_operand.vmem [shape: f32[8,128], index: 0, kind: input, shape index: {}]   ;;  %s1550_s1 = inlined_call_operand.vmem [shape: f32[64,32], index: 1, kind: input, shape index: {}]   ;;  %s1551_s2 = inlined_call_operand.vmem [shape: f32[8,64], index: 2, kind: input, shape index: {}]   ;;  %s1552_s3 = inlined_call_operand.hbm [shape: f32[8,128], index: 3, kind: output, shape index: {}]  }
   0x1   :  { %v15_v0 = vld [vmem:[%s1549_s0] sm:$0xff] }
   0x2   :  { %v1192_v1 = vmul.f32 0.5, %v15_v0 }
   0x3   :  { %8 = vsyncpa [#allocation3], 0  ;;  %v1161_v13 = vmov 683565275   ;;  %v1162_v15 = vmov 2475754826  }
   0x4   :  { %v20_v2 = vand.u32 2139095040, %v1192_v1  ;;  %v17_v4 = vand.u32 2147483647, %v1192_v1  ;;  %v1163_v17 = vmov 2131351028   ;;  %vm19_vm12 = vcmp.lt.s32.totalorder %v1192_v1, 0 }
   0x5   :  { %v1164_v19 = vmov 2102212464   ;;  %v1165_v21 = vmov 920167782   ;;  %v1166_v27 = vmov 1326507024  }
   0x6   :  { %v21_v3 = vshrl.u32 %v20_v2, 23  ;;  %v24_v7 = vand.u32 8388607, %v17_v4  ;;  %v1167_v2 = vmov 0   ;;  %vm18_vm13 = vcmp.le.f32.partialorder %v17_v4, 0.7853982 }
   0x7   :  { %vm419_vm14 = vcmask 261120   ;;  %v418_v4 = vld [vmem:[%s1550_s1 + $0x38] sm:$0xff]  ;;  %s1104_s6 = sshll.u32 %s1552_s3, 4  ;;  %s1105_s6 = int_to_ptr.hbm [resolvable:$true] %s1104_s6 }
   0x8   :  { %v1113_v5 = vadd.s32 4294967169, %v21_v3  ;;  %v25_v10 = vor.u32 8388608, %v24_v7 }
   0xa   :  { %v27_v6 = vadd.s32 1, %v1113_v5  ;;  %v1201_v29 = vshll.u32 %v25_v10, 8 }
   0xc   :  { %vm28_vm0 = vcmp.gt.s32.totalorder %v27_v6, 0  ;;  %v66_v41 = vand.u32 65535, %v1201_v29  ;;  %v67_v42 = vshrl.u32 %v1201_v29, 16 }
   0xd   :  { %v29_v8 = vsel %vm28_vm0, %v27_v6, 0  ;;  %vm160_vm0 = vweird.f32 %v1192_v1 }
   0xe   :  { %v31_v9 = vand.u32 31, %v29_v8  ;;  %v1198_v11 = vshrl.u32 %v29_v8, 5 }
  0x10   :  { %v32_v12 = vsub.s32 32, %v31_v9  ;;  %v34_v14 = vshll.u32 %v1161_v13, %v31_v9  ;;  %v37_v16 = vshll.u32 %v1162_v15, %v31_v9  ;;  %v40_v18 = vshll.u32 %v1163_v17, %v31_v9 }
  0x11   :  { %v43_v20 = vshll.u32 %v1164_v19, %v31_v9  ;;  %v46_v22 = vshll.u32 %v1165_v21, %v31_v9  ;;  %vm49_vm1 = vcmp.lt.s32.totalorder %v1198_v11, 1  ;;  %vm52_vm2 = vcmp.lt.s32.totalorder %v1198_v11, 4 }
  0x12   :  { %v35_v23 = vshrl.u32 %v1162_v15, %v32_v12  ;;  %v38_v24 = vshrl.u32 %v1163_v17, %v32_v12  ;;  %v41_v25 = vshrl.u32 %v1164_v19, %v32_v12  ;;  %v44_v26 = vshrl.u32 %v1165_v21, %v32_v12 }
  0x13   :  { %v47_v28 = vshrl.u32 %v1166_v27, %v32_v12  ;;  %vm51_vm3 = vcmp.lt.s32.totalorder %v1198_v11, 3  ;;  %vm50_vm4 = vcmp.lt.s32.totalorder %v1198_v11, 2  ;;  %v33_v49 = vshrl.u32 %v1161_v13, %v32_v12 }
  0x14   :  { %v36_v30 = vor.u32 %v35_v23, %v34_v14  ;;  %v39_v31 = vor.u32 %v38_v24, %v37_v16  ;;  %v42_v32 = vor.u32 %v41_v25, %v40_v18  ;;  %v45_v33 = vor.u32 %v44_v26, %v43_v20 }
  0x15   :  { %v48_v34 = vor.u32 %v47_v28, %v46_v22 }
  0x16   :  { %v57_v35 = vsel %vm49_vm1, %v36_v30, %v39_v31  ;;  %v61_v36 = vsel %vm49_vm1, %v39_v31, %v42_v32  ;;  %v58_v37 = vsel %vm52_vm2, %v45_v33, 920167782  ;;  %v53_v62 = vsel %vm49_vm1, %v33_v49, %v36_v30 }
  0x17   :  { %v62_v38 = vsel %vm52_vm2, %v48_v34, 1326507024  ;;  %v59_v39 = vsel %vm51_vm3, %v42_v32, %v58_v37  ;;  %v54_v0 = vsel %vm52_vm2, %v42_v32, 2102212464 }
  0x18   :  { %v63_v40 = vsel %vm51_vm3, %v45_v33, %v62_v38  ;;  %v60_v43 = vsel %vm50_vm4, %v57_v35, %v59_v39  ;;  %v55_v13 = vsel %vm51_vm3, %v39_v31, %v54_v0 }
  0x19   :  { %v64_v44 = vsel %vm50_vm4, %v61_v36, %v63_v40  ;;  %v90_v47 = vand.u32 65535, %v60_v43  ;;  %v91_v48 = vshrl.u32 %v60_v43, 16  ;;  %v56_v21 = vsel %vm50_vm4, %v53_v62, %v55_v13 }
  0x1a   :  { %v68_v45 = vand.u32 65535, %v64_v44  ;;  %v69_v46 = vshrl.u32 %v64_v44, 16  ;;  %v110_v25 = vmul.u32 %v1201_v29, %v56_v21 }
  0x1b   :  { %v92_v53 = vmul.u32 %v90_v47, %v66_v41  ;;  %v93_v54 = vmul.u32 %v91_v48, %v66_v41  ;;  %v94_v55 = vmul.u32 %v90_v47, %v67_v42  ;;  %v95_v59 = vmul.u32 %v91_v48, %v67_v42 }
  0x1c   :  { %v70_v50 = vmul.u32 %v68_v45, %v66_v41  ;;  %v71_v51 = vmul.u32 %v69_v46, %v66_v41  ;;  %v72_v52 = vmul.u32 %v68_v45, %v67_v42  ;;  %v73_v56 = vmul.u32 %v69_v46, %v67_v42 }
  0x1d   :  { %v96_v60 = vshll.u32 %v93_v54, 16  ;;  %v98_v61 = vshll.u32 %v94_v55, 16  ;;  %v97_v10 = vshrl.u32 %v93_v54, 16  ;;  %v99_v17 = vshrl.u32 %v94_v55, 16 }
  0x1e   :  { %v74_v57 = vshll.u32 %v71_v51, 16  ;;  %v76_v58 = vshll.u32 %v72_v52, 16  ;;  %v75_v6 = vshrl.u32 %v71_v51, 16  ;;  %v77_v14 = vshrl.u32 %v72_v52, 16 }
  0x1f   :  { %vm100_vm6 = vc.u32 %v92_v53, %v96_v60  ;;  %v102_v5 = vadd.s32 %v96_v60, %v92_v53 }
  0x20   :  { %vm78_vm5 = vc.u32 %v70_v50, %v74_v57  ;;  %v80_v63 = vadd.s32 %v74_v57, %v70_v50  ;;  %v101_v8 = vsel %vm100_vm6, 1, %v1167_v2  ;;  %v326_v50 = vlaneseq }
  0x21   :  { %v79_v3 = vsel %vm78_vm5, 1, %v1167_v2  ;;  %v103_v12 = vadd.s32 %v101_v8, %v95_v59  ;;  %vm104_vm8 = vc.u32 %v102_v5, %v98_v61  ;;  %v106_v20 = vadd.s32 %v102_v5, %v98_v61 }
  0x22   :  { %v81_v7 = vadd.s32 %v79_v3, %v73_v56  ;;  %vm82_vm7 = vc.u32 %v80_v63, %v76_v58  ;;  %v105_v16 = vsel %vm104_vm8, 1, %v1167_v2  ;;  %v1237_v55 = vshrl.u32 %v326_v50, 7  ;;  %v411_v58 = vld [vmem:[%s1550_s1] sm:$0xff] }
  0x23   :  { %v83_v9 = vsel %vm82_vm7, 1, %v1167_v2  ;;  %v107_v18 = vadd.s32 %v105_v16, %v103_v12  ;;  %v421_v3 = vsel %vm419_vm14, %v411_v58, 0  ;;  %v442_v5 = vsel %vm419_vm14, %v418_v4, 0 }
  0x24   :  { %v85_v15 = vadd.s32 %v83_v9, %v81_v7  ;;  %v328_v62 = vadd.s32 8, %v1237_v55  ;;  %v1248_v12 = vand.u32 4294901760, %v421_v3  ;;  %v369_v21 = vshra.s32 %v1237_v55, 1 }
  0x25   :  { %v108_v22 = vadd.s32 %v107_v18, %v97_v10  ;;  %v347_v18 = vshra.s32 %v1237_v55, 2 }
  0x26   :  { %v86_v19 = vadd.s32 %v85_v15, %v75_v6  ;;  %v330_v9 = vshra.s32 %v328_v62, 3  ;;  %v348_v10 = vshra.s32 %v328_v62, 2  ;;  %v1250_v15 = vand.u32 4294901760, %v442_v5 }
  0x27   :  { %v109_v24 = vadd.s32 %v108_v22, %v99_v17  ;;  %v370_v16 = vshra.s32 %v328_v62, 1  ;;  %v329_v17 = vshra.s32 %v1237_v55, 3 }
  0x28   :  { %v87_v23 = vadd.s32 %v86_v19, %v77_v14  ;;  %v1256_v22 = vand.u32 1, %v330_v9 }
  0x29   :  { %v113_v26 = vadd.s32 1, %v109_v24 }
  0x2a   :  { %vm112_vm9 = vc.u32 %v87_v23, %v106_v20  ;;  %v111_v11 = vadd.s32 %v106_v20, %v87_v23  ;;  %v1258_v23 = vand.u32 1, %v348_v10  ;;  %vm334_vm6 = vcmp.ne.s32.totalorder %v1256_v22, 0 }
  0x2b   :  { %v114_v27 = vsel %vm112_vm9, %v113_v26, %v109_v24  ;;  %v1261_v24 = vsub.f32 %v421_v3, %v1248_v12 }
  0x2c   :  { %v115_v28 = vadd.s32 %v114_v27, %v110_v25  ;;  %v1264_v27 = vsub.f32 %v442_v5, %v1250_v15  ;;  %vm352_vm7 = vcmp.ne.s32.totalorder %v1258_v23, 0 }
  0x2e   :  { %v116_v30 = vadd.s32 536870912, %v115_v28 }
  0x30   :  { %v117_v31 = vshrl.u32 %v116_v30, 30  ;;  %v1268_v30 = vand.u32 1, %v329_v17 }
  0x32   :  { %v118_v32 = vshll.u32 %v117_v31, 30  ;;  %v141_v48 = vsub.s32 4, %v117_v31  ;;  %vm333_vm9 = vcmp.ne.s32.totalorder %v1268_v30, 0 }
  0x34   :  { %v119_v33 = vsub.s32 %v115_v28, %v118_v32  ;;  %v142_v52 = vsel %vm19_vm12, %v141_v48, %v117_v31  ;;  %v1266_v28 = vand.u32 1, %v370_v16  ;;  %v1270_v31 = vand.u32 1, %v347_v18 }
  0x35   :  { %v144_v56 = vsel %vm18_vm13, 0, %v142_v52 }
  0x36   :  { %vm120_vm10 = vcmp.lt.s32.totalorder %v119_v33, 0  ;;  %v121_v34 = vsub.s32 0, %v119_v33  ;;  %v315_v61 = vadd.s32 3, %v144_v56  ;;  %v161_v2 = vand.u32 3, %v144_v56 }
  0x37   :  { %vm374_vm8 = vcmp.ne.s32.totalorder %v1266_v28, 0 }
  0x38   :  { %v122_v35 = vsel %vm120_vm10, %v121_v34, %v119_v33  ;;  %v316_v8 = vand.u32 3, %v315_v61  ;;  %vm162_vm15 = vcmp.lt.s32.totalorder %v161_v2, 2  ;;  %vm163_vm1 = vcmp.eq.s32.totalorder %v161_v2, 0 }
  0x39   :  { %v123_v36 = vclz %v122_v35  ;;  %vm166_vm2 = vcmp.eq.s32.totalorder %v161_v2, 2  ;;  %v392_v34 = vand.u32 1, %v328_v62  ;;  %v1272_v35 = vand.u32 1, %v369_v21 }
  0x3a   :  { %vm318_vm3 = vcmp.eq.s32.totalorder %v316_v8, 0  ;;  %vm321_vm4 = vcmp.eq.s32.totalorder %v316_v8, 2  ;;  %vm317_vm5 = vcmp.lt.s32.totalorder %v316_v8, 2  ;;  %vm351_vm10 = vcmp.ne.s32.totalorder %v1270_v31, 0 }
  0x3b   :  { %v1114_v37 = vadd.s32 4294967294, %v123_v36  ;;  %v412_v36 = vld [vmem:[%s1550_s1 + $0x8] sm:$0xff] }
  0x3d   :  { %vm1115_vm11 = vcmp.lt.s32.totalorder %v1114_v37, 0 }
  0x3e   :  { %v126_v38 = vsel %vm1115_vm11, 0, %v1114_v37  ;;  %v391_v37 = vand.u32 1, %v1237_v55  ;;  %vm1290_vm11 = vcmp.ne.s32.totalorder %v392_v34, 0 }
  0x3f   :  { %v127_v39 = vsub.s32 32, %v126_v38  ;;  %v128_v40 = vshll.u32 %v119_v33, %v126_v38  ;;  %v131_v41 = vsub.s32 4294967266, %v126_v38 }
  0x41   :  { %v129_v29 = vshrl.u32 %v111_v11, %v127_v39  ;;  %v132_v42 = vadd.s32 127, %v131_v41  ;;  %v466_v11 = vand.u32 4294901760, %v1261_v24  ;;  %v522_v41 = vand.u32 4294901760, %v1264_v27 }
  0x43   :  { %v130_v43 = vor.u32 %v129_v29, %v128_v40  ;;  %v133_v44 = vshll.u32 %v132_v42, 23  ;;  %v424_v29 = vsel %vm419_vm14, %v412_v36, 0  ;;  %v1304_v48 = vsub.f32 %v1261_v24, %v466_v11 }
  0x44   :  { %v1315_v52 = vand.u32 4294901760, %v424_v29 }
  0x45   :  { %v134_v45 = vor.u32 4788187, %v133_v44  ;;  %v137_v46 = vcvt.s32.f32 %v130_v43 }
  0x47   :  { %v135_v47 = vand.u32 2147483647, %v134_v45 }
  0x49   :  { %v138_v49 = vmul.f32 %v137_v46, %v135_v47 }
  0x4b   :  { %v139_v51 = vxor.u32 2147483648, %v138_v49 }
  0x4d   :  { %v140_v53 = vsel %vm19_vm12, %v139_v51, %v138_v49  ;;  %vm373_vm12 = vcmp.ne.s32.totalorder %v1272_v35, 0  ;;  %v1313_v51 = vsub.f32 %v1264_v27, %v522_v41 }
  0x4e   :  { %v143_v54 = vsel %vm18_vm13, %v1192_v1, %v140_v53  ;;  %vm1297_vm13 = vcmp.ne.s32.totalorder %v391_v37, 0 }
  0x4f   :  { %v145_v57 = vmul.f32 %v143_v54, %v143_v54 }
  0x51   :  { %v146_v59 = vmul.f32 -0.001358992, %v145_v57  ;;  %v153_v60 = vmul.f32 -0.00019511016, %v145_v57 }
  0x53   :  { %v147_v63 = vadd.f32 0.041655596, %v146_v59  ;;  %v154_v0 = vadd.f32 0.008332121, %v153_v60 }
  0x55   :  { %v148_v6 = vmul.f32 %v147_v63, %v145_v57  ;;  %v155_v7 = vmul.f32 %v154_v0, %v145_v57 }
  0x57   :  { %v149_v13 = vadd.f32 -0.4999988, %v148_v6  ;;  %v156_v14 = vadd.f32 -0.16666654, %v155_v7 }
  0x59   :  { %v150_v19 = vmul.f32 %v149_v13, %v145_v57  ;;  %v157_v20 = vmul.f32 %v156_v14, %v145_v57 }
  0x5b   :  { %v151_v25 = vadd.f32 1.0, %v150_v19  ;;  %v158_v26 = vadd.f32 1.0, %v157_v20 }
  0x5d   :  { %v159_v32 = vmul.f32 %v158_v26, %v143_v54  ;;  %v167_v33 = vxor.u32 2147483648, %v151_v25 }
  0x5f   :  { %v164_v38 = vxor.u32 2147483648, %v159_v32  ;;  %v168_v39 = vsel %vm166_vm2, %v167_v33, %v159_v32  ;;  %v323_v40 = vsel %vm321_vm4, %v167_v33, %v159_v32 }
  0x61   :  { %v165_v42 = vsel %vm163_vm1, %v151_v25, %v164_v38  ;;  %v320_v43 = vsel %vm318_vm3, %v151_v25, %v164_v38 }
  0x62   :  { %v169_v45 = vsel %vm162_vm15, %v165_v42, %v168_v39  ;;  %v324_v46 = vsel %vm317_vm5, %v320_v43, %v323_v40  ;;  %v413_v39 = vld [vmem:[%s1550_s1 + $0x10] sm:$0xff]  ;;  %v1357_v40 = vsub.f32 %v424_v29, %v1315_v52 }
  0x63   :  { %v170_v49 = vsel %vm160_vm0, nan, %v169_v45  ;;  %v325_v50 = vsel %vm160_vm0, nan, %v324_v46  ;;  %v427_v46 = vsel %vm419_vm14, %v413_v39, 0 }
  0x64   :  { %v343_v53 = vperm.slane %v325_v50, 4  ;;  %v344_v54 = vperm.slane %v170_v49, 4  ;;  %v361_v55 = vperm.slane %v325_v50, 5  ;;  %v362_v56 = vperm.slane %v170_v49, 5 }
  0x65   :  { %v383_v57 = vperm.slane %v325_v50, 6  ;;  %v384_v58 = vperm.slane %v170_v49, 6  ;;  %v403_v59 = vperm.slane %v325_v50, 7  ;;  %v404_v60 = vperm.slane %v170_v49, 7 }
  0x66   :  { %v346_v4 = vsel %vm334_vm6, %v343_v53, %v344_v54  ;;  %v364_v1 = vsel %vm352_vm7, %v361_v55, %v362_v56  ;;  %v345_v61 = vsel %vm333_vm9, %v343_v53, %v344_v54  ;;  %v363_v62 = vsel %vm351_vm10, %v361_v55, %v362_v56 }
  0x67   :  { %v368_v63 = vmul.f32 %v364_v1, %v346_v4  ;;  %v386_v0 = vsel %vm374_vm8, %v383_v57, %v384_v58  ;;  %v406_v2 = vsel %vm1290_vm11, %v403_v59, %v404_v60  ;;  %v367_v3 = vmul.f32 %v363_v62, %v345_v61 }
  0x68   :  { %v385_v5 = vsel %vm373_vm12, %v383_v57, %v384_v58  ;;  %v405_v6 = vsel %vm1297_vm13, %v403_v59, %v404_v60  ;;  %v339_v7 = vperm.slane %v325_v50, 0  ;;  %v340_v8 = vperm.slane %v170_v49, 0 }
  0x69   :  { %v390_v9 = vmul.f32 %v386_v0, %v368_v63  ;;  %v389_v10 = vmul.f32 %v385_v5, %v367_v3  ;;  %v357_v13 = vperm.slane %v325_v50, 1  ;;  %v358_v14 = vperm.slane %v170_v49, 1 }
  0x6a   :  { %v342_v16 = vsel %vm334_vm6, %v339_v7, %v340_v8  ;;  %v379_v17 = vperm.slane %v325_v50, 2  ;;  %v380_v18 = vperm.slane %v170_v49, 2  ;;  %v399_v19 = vperm.slane %v325_v50, 3 }
  0x6b   :  { %v410_v20 = vmul.f32 %v406_v2, %v390_v9  ;;  %v409_v21 = vmul.f32 %v405_v6, %v389_v10  ;;  %v360_v25 = vsel %vm352_vm7, %v357_v13, %v358_v14  ;;  %v400_v26 = vperm.slane %v170_v49, 3  ;;  %v415_v10 = vld [vmem:[%s1550_s1 + $0x20] sm:$0xff] }
  0x6c   :  { %v366_v32 = vmul.f32 %v360_v25, %v342_v16  ;;  %v382_v33 = vsel %vm374_vm8, %v379_v17, %v380_v18  ;;  %v341_v34 = vsel %vm333_vm9, %v339_v7, %v340_v8  ;;  %v359_v22 = vsel %vm351_vm10, %v357_v13, %v358_v14 }
  0x6d   :  { %v1343_v36 = vand.u32 4294901760, %v410_v20  ;;  %v1345_v37 = vand.u32 4294901760, %v409_v21  ;;  %v402_v38 = vsel %vm1290_vm11, %v399_v19, %v400_v26  ;;  %v365_v23 = vmul.f32 %v359_v22, %v341_v34  ;;  %v417_v22 = vld [vmem:[%s1550_s1 + $0x30] sm:$0xff] }
  0x6e   :  { %v388_v28 = vmul.f32 %v382_v33, %v366_v32  ;;  %v381_v30 = vsel %vm373_vm12, %v379_v17, %v380_v18  ;;  %v401_v31 = vsel %vm1297_vm13, %v399_v19, %v400_v26  ;;  %v468_v50 = vand.u32 4294901760, %v1304_v48  ;;  %v414_v48 = vld [vmem:[%s1550_s1 + $0x18] sm:$0xff] }
  0x6f   :  { %457 = vmatpush.msra.mxu0 %v1343_v36  ;;  %1119 = vmatpush.msra.mxu2 %v1343_v36  ;;  %v387_v42 = vmul.f32 %v381_v30, %v365_v23  ;;  %v542_v43 = vsub.f32 %v410_v20, %v1343_v36  ;;  %v548_v44 = vsub.f32 %v409_v21, %v1345_v37  ;;  %v524_v53 = vand.u32 4294901760, %v1313_v51  ;;  %v416_v20 = vld [vmem:[%s1550_s1 + $0x28] sm:$0xff] }
  0x70   :  { %v408_v45 = vmul.f32 %v402_v38, %v388_v28  ;;  %v474_v54 = vand.u32 4294901760, %v1357_v40  ;;  %v1373_v58 = vand.u32 4294901760, %v427_v46  ;;  %v430_v2 = vsel %vm419_vm14, %v414_v48, 0 }
  0x71   :  { %459 = vmatpush.msra.mxu0 %v1345_v37  ;;  %1120 = vmatpush.msra.mxu2 %v1345_v37  ;;  %v407_v35 = vmul.f32 %v401_v31, %v387_v42  ;;  %v543_v47 = vand.u32 4294901760, %v542_v43  ;;  %v549_v29 = vand.u32 4294901760, %v548_v44  ;;  %v1392_v9 = vand.u32 4294901760, %v430_v2 }
  0x72   :  { %v1366_v49 = vand.u32 4294901760, %v408_v45  ;;  %v475_v62 = vsub.f32 %v1357_v40, %v474_v54  ;;  %v1388_v63 = vsub.f32 %v427_v46, %v1373_v58  ;;  %v433_v16 = vsel %vm419_vm14, %v415_v10, 0 }
  0x73   :  { %v1371_v55 = vand.u32 4294901760, %v407_v35  ;;  %v544_v56 = vsub.f32 %v542_v43, %v543_v47  ;;  %v550_v57 = vsub.f32 %v548_v44, %v549_v29  ;;  %v489_v14 = vsub.f32 %v430_v2, %v1392_v9 }
  0x74   :  { %461 = vmatpush.msra.mxu0 %v1366_v49  ;;  %1121 = vmatpush.msra.mxu2 %v1366_v49  ;;  %v554_v59 = vsub.f32 %v408_v45, %v1366_v49  ;;  %v476_v7 = vand.u32 4294901760, %v475_v62  ;;  %v482_v8 = vand.u32 4294901760, %v1388_v63  ;;  %v496_v19 = vand.u32 4294901760, %v433_v16 }
  0x75   :  { %v545_v60 = vand.u32 4294901760, %v544_v56  ;;  %v560_v4 = vsub.f32 %v407_v35, %v1371_v55  ;;  %v551_v51 = vand.u32 4294901760, %v550_v57  ;;  %v490_v18 = vand.u32 4294901760, %v489_v14 }
  0x76   :  { %463 = vmatpush.msra.mxu0 %v1371_v55  ;;  %1122 = vmatpush.msra.mxu2 %v1371_v55  ;;  %v555_v1 = vand.u32 4294901760, %v554_v59  ;;  %v483_v13 = vsub.f32 %v1388_v63, %v482_v8  ;;  %v497_v25 = vsub.f32 %v433_v16, %v496_v19  ;;  %v436_v26 = vsel %vm419_vm14, %v416_v20, 0 }
  0x77   :  { %469 = vmatmul.f32.vlgmr.msra.gmra.mxu0 %v468_v50  ;;  %525 = vmatmul.f32.vlgmr.msra.gmra.mxu2 %v524_v53  ;;  %v561_v61 = vand.u32 4294901760, %v560_v4  ;;  %v491_v21 = vsub.f32 %v489_v14, %v490_v18  ;;  %v504_v34 = vand.u32 4294901760, %v436_v26 }
  0x78   :  { %546 = vmatpush.msra.mxu1 %v545_v60  ;;  %1123 = vmatpush.msra.mxu3 %v545_v60  ;;  %v556_v0 = vsub.f32 %v554_v59, %v555_v1  ;;  %v484_v17 = vand.u32 4294901760, %v483_v13  ;;  %v498_v33 = vand.u32 4294901760, %v497_v25 }
  0x79   :  { %612 = vmatpush.msrb.mxu2 %v542_v43  ;;  %v562_v3 = vsub.f32 %v560_v4, %v561_v61  ;;  %747 = vmatpush.msrb.mxu0 %v543_v47  ;;  %v492_v32 = vand.u32 4294901760, %v491_v21 }
  0x7a   :  { %552 = vmatpush.msra.mxu1 %v551_v51  ;;  %1124 = vmatpush.msra.mxu3 %v551_v51  ;;  %v557_v5 = vand.u32 4294901760, %v556_v0 }
  0x7b   :  { %615 = vmatpush.msrb.mxu2 %v548_v44  ;;  %v563_v6 = vand.u32 4294901760, %v562_v3  ;;  %751 = vmatpush.msrb.mxu0 %v549_v29 }
  0x7c   :  { %558 = vmatpush.msra.mxu1 %v557_v5  ;;  %1125 = vmatpush.msra.mxu3 %v557_v5 }
  0x7d   :  { %618 = vmatpush.msrb.mxu2 %v554_v59  ;;  %755 = vmatpush.msrb.mxu0 %v555_v1 }
  0x7e   :  { %564 = vmatpush.msra.mxu1 %v563_v6  ;;  %1126 = vmatpush.msra.mxu3 %v563_v6 }
  0x7f   :  { %621 = vmatpush.msrb.mxu2 %v560_v4  ;;  %477 = vmatmul.f32.gmra.mxu0 %v476_v7 }
  0x80   :  { %566 = vmatmul.f32.vlgmr.msra.gmra.mxu1 %v1248_v12  ;;  %594 = vmatmul.f32.vlgmr.msra.gmra.mxu3 %v1250_v15 }
  0x81   :  { %624 = vmatmul.f32.vlgmr.msrb.gmra.mxu2 %v1261_v24  ;;  %676 = vmatpush.msrb.mxu3 %v1343_v36  ;;  %v439_v24 = vsel %vm419_vm14, %v417_v22, 0  ;;  %vm855_vm14 = vcmask 523264  }
  0x82   :  { %759 = vmatpush.msrb.mxu0 %v561_v61  ;;  %806 = vmatpush.msrb.mxu1 %v1343_v36  ;;  %v499_v36 = vsub.f32 %v497_v25, %v498_v33  ;;  %v512_v23 = vand.u32 4294901760, %v439_v24 }
  0x83   :  { %678 = vmatpush.msrb.mxu3 %v1345_v37 }
  0x84   :  { %808 = vmatpush.msrb.mxu1 %v1345_v37  ;;  %v505_v37 = vsub.f32 %v436_v26, %v504_v34  ;;  %v513_v28 = vsub.f32 %v439_v24, %v512_v23 }
  0x85   :  { %680 = vmatpush.msrb.mxu3 %v1366_v49 }
  0x86   :  { %810 = vmatpush.msrb.mxu1 %v1366_v49  ;;  %v506_v38 = vand.u32 4294901760, %v505_v37  ;;  %v514_v31 = vand.u32 4294901760, %v513_v28 }
  0x87   :  { %682 = vmatpush.msrb.mxu3 %v1371_v55  ;;  %485 = vmatmul.f32.gmra.mxu0 %v484_v17 }
  0x88   :  { %570 = vmatmul.f32.gmra.mxu1 %v1315_v52  ;;  %686 = vmatmul.f32.vlgmr.msrb.gmra.mxu3 %v466_v11  ;;  %v500_v11 = vand.u32 4294901760, %v499_v36  ;;  %v507_v39 = vsub.f32 %v505_v37, %v506_v38  ;;  %v515_v42 = vsub.f32 %v513_v28, %v514_v31 }
  0x89   :  { %629 = vmatmul.f32.gmra.mxu2 %v1357_v40  ;;  %812 = vmatpush.msrb.mxu1 %v1371_v55 }
  0x8a   :  { %v508_v30 = vand.u32 4294901760, %v507_v39  ;;  %v516_v40 = vand.u32 4294901760, %v515_v42 }
  0x8f   :  { %493 = vmatmul.f32.gmra.mxu0 %v492_v32 }
  0x90   :  { %574 = vmatmul.f32.gmra.mxu1 %v1373_v58  ;;  %692 = vmatmul.f32.gmra.mxu3 %v474_v54 }
  0x91   :  { %634 = vmatmul.f32.gmra.mxu2 %v1388_v63 }
  0x97   :  { %501 = vmatmul.f32.gmra.mxu0 %v500_v11 }
  0x98   :  { %578 = vmatmul.f32.gmra.mxu1 %v1392_v9  ;;  %698 = vmatmul.f32.gmra.mxu3 %v482_v8 }
  0x99   :  { %639 = vmatmul.f32.gmra.mxu2 %v489_v14 }
  0x9f   :  { %509 = vmatmul.f32.gmra.mxu0 %v508_v30 }
  0xa0   :  { %582 = vmatmul.f32.gmra.mxu1 %v496_v19  ;;  %704 = vmatmul.f32.gmra.mxu3 %v490_v18 }
  0xa1   :  { %644 = vmatmul.f32.gmra.mxu2 %v497_v25 }
  0xa7   :  { %517 = vmatmul.f32.gmra.mxu0 %v516_v40 }
  0xa8   :  { %586 = vmatmul.f32.gmra.mxu1 %v504_v34  ;;  %710 = vmatmul.f32.gmra.mxu3 %v498_v33 }
  0xa9   :  { %649 = vmatmul.f32.gmra.mxu2 %v505_v37 }
  0xaf   :  { %761 = vmatmul.f32.vlgmr.msrb.gmra.mxu0 %v1248_v12 }
  0xb0   :  { %590 = vmatmul.f32.gmra.mxu1 %v512_v23  ;;  %716 = vmatmul.f32.gmra.mxu3 %v506_v38 }
  0xb1   :  { %654 = vmatmul.f32.gmra.mxu2 %v513_v28 }
  0xb7   :  { %765 = vmatmul.f32.gmra.mxu0 %v1315_v52 }
  0xb8   :  { %722 = vmatmul.f32.gmra.mxu3 %v514_v31  ;;  %814 = vmatmul.f32.vlgmr.msrb.gmra.mxu1 %v1248_v12 }
  0xb9   :  { %659 = vmatmul.f32.gmra.mxu2 %v1264_v27 }
  0xbf   :  { %769 = vmatmul.f32.gmra.mxu0 %v1373_v58 }
  0xc0   :  { %728 = vmatmul.f32.gmra.mxu3 %v522_v41  ;;  %818 = vmatmul.f32.gmra.mxu1 %v1315_v52 }
  0xc7   :  { %773 = vmatmul.f32.gmra.mxu0 %v1392_v9 }
  0xc8   :  { %822 = vmatmul.f32.gmra.mxu1 %v1373_v58 }
  0xcf   :  { %777 = vmatmul.f32.gmra.mxu0 %v496_v19 }
  0xd0   :  { %826 = vmatmul.f32.gmra.mxu1 %v1392_v9 }
  0xd7   :  { %781 = vmatmul.f32.gmra.mxu0 %v504_v34 }
  0xd8   :  { %830 = vmatmul.f32.gmra.mxu1 %v496_v19 }
  0xdf   :  { %785 = vmatmul.f32.gmra.mxu0 %v512_v23 }
  0xe0   :  { %834 = vmatmul.f32.gmra.mxu1 %v504_v34 }
  0xe7   :  { %789 = vmatmul.f32.gmra.mxu0 %v1250_v15 }
  0xe8   :  { %838 = vmatmul.f32.gmra.mxu1 %v512_v23 }
  0xf0   :  { %842 = vmatmul.f32.gmra.mxu1 %v1250_v15 }
  0xf4   :  { %v470_v12 = vpop.f32.mrf.mxu0 }
  0xfa   :  { %v526_v27 = vpop.f32.mrf.mxu2 }
  0xfc   :  { %v478_v41 = vpop.f32.mrf.mxu0 }
  0xfd   :  { %v567_v52 = vpop.f32.mrf.mxu1 }
  0xfe   :  { %v568_v43 = vadd.f32 %v567_v52, %v470_v12 }
 0x103   :  { %v595_v44 = vpop.f32.mrf.mxu3 }
 0x104   :  { %v625_v45 = vpop.f32.mrf.mxu2  ;;  %v486_v46 = vpop.f32.mrf.mxu0  ;;  %v596_v40 = vadd.f32 %v595_v44, %v526_v27  ;;  %v846_v44 = vld [vmem:[%s1551_s2] sm:$0xff]  ;;  %s1168_s2 = smov [#allocation2]  }
 0x105   :  { %v626_v35 = vadd.f32 %v625_v45, %v568_v43  ;;  %v571_v47 = vpop.f32.mrf.mxu1  ;;  %s1102_s30 = sshll.u32 %s1168_s2, 4  ;;  %s1103_s30 = int_to_ptr.vmem [resolvable:$true] %s1102_s30 }
 0x106   :  { %v572_v29 = vadd.f32 %v571_v47, %v478_v41 }
 0x10b   :  { %v687_v49 = vpop.f32.mrf.mxu3 }
 0x10c   :  { %v688_v50 = vadd.f32 %v687_v49, %v626_v35  ;;  %v494_v53 = vpop.f32.mrf.mxu0  ;;  %v630_v1 = vpop.f32.mrf.mxu2 }
 0x10d   :  { %v575_v54 = vpop.f32.mrf.mxu1  ;;  %v631_v47 = vadd.f32 %v630_v1, %v572_v29 }
 0x10e   :  { %v576_v55 = vadd.f32 %v575_v54, %v486_v46 }
 0x113   :  { %v693_v61 = vpop.f32.mrf.mxu3 }
 0x114   :  { %v502_v56 = vpop.f32.mrf.mxu0  ;;  %v635_v2 = vpop.f32.mrf.mxu2 }
 0x115   :  { %v579_v57 = vpop.f32.mrf.mxu1  ;;  %v636_v12 = vadd.f32 %v635_v2, %v576_v55 }
 0x116   :  { %v580_v58 = vadd.f32 %v579_v57, %v494_v53 }
 0x11b   :  { %v699_v5 = vpop.f32.mrf.mxu3 }
 0x11c   :  { %v510_v15 = vpop.f32.mrf.mxu0  ;;  %v640_v9 = vpop.f32.mrf.mxu2  ;;  %v700_v49 = vadd.f32 %v699_v5, %v636_v12 }
 0x11d   :  { %v583_v59 = vpop.f32.mrf.mxu1  ;;  %v641_v28 = vadd.f32 %v640_v9, %v580_v58 }
 0x11e   :  { %v584_v60 = vadd.f32 %v583_v59, %v502_v56 }
 0x123   :  { %v705_v13 = vpop.f32.mrf.mxu3 }
 0x124   :  { %v518_v4 = vpop.f32.mrf.mxu0  ;;  %v645_v17 = vpop.f32.mrf.mxu2  ;;  %v706_v43 = vadd.f32 %v705_v13, %v641_v28 }
 0x125   :  { %v587_v48 = vpop.f32.mrf.mxu1  ;;  %v646_v38 = vadd.f32 %v645_v17, %v584_v60 }
 0x126   :  { %v588_v51 = vadd.f32 %v587_v48, %v510_v15  ;;  %v694_v15 = vadd.f32 %v693_v61, %v631_v47 }
 0x12b   :  { %v711_v18 = vpop.f32.mrf.mxu3 }
 0x12c   :  { %v762_v62 = vpop.f32.mrf.mxu0  ;;  %v650_v21 = vpop.f32.mrf.mxu2  ;;  %v712_v30 = vadd.f32 %v711_v18, %v646_v38 }
 0x12d   :  { %v591_v63 = vpop.f32.mrf.mxu1  ;;  %v763_v0 = vadd.f32 %v762_v62, %v688_v50  ;;  %v651_v24 = vadd.f32 %v650_v21, %v588_v51 }
 0x12e   :  { %v592_v36 = vadd.f32 %v591_v63, %v518_v4  ;;  %v857_v63 = vsel %vm855_vm14, %v846_v44, 0 }
 0x133   :  { %v717_v25 = vpop.f32.mrf.mxu3 }
 0x134   :  { %v766_v3 = vpop.f32.mrf.mxu0  ;;  %v655_v33 = vpop.f32.mrf.mxu2  ;;  %v718_v23 = vadd.f32 %v717_v25, %v651_v24 }
 0x135   :  { %v815_v6 = vpop.f32.mrf.mxu1  ;;  %v656_v11 = vadd.f32 %v655_v33, %v592_v36  ;;  %v767_v48 = vadd.f32 %v766_v3, %v694_v15 }
 0x136   :  { %v1441_v7 = vadd.f32 %v815_v6, %v763_v0 }
 0x138   :  { %v847_v18 = vmul.f32 %v1441_v7, %v1441_v7 }
 0x13b   :  { %v723_v34 = vpop.f32.mrf.mxu3 }
 0x13c   :  { %v770_v8 = vpop.f32.mrf.mxu0  ;;  %v724_v39 = vadd.f32 %v723_v34, %v656_v11  ;;  %v660_v41 = vpop.f32.mrf.mxu2 }
 0x13d   :  { %v819_v10 = vpop.f32.mrf.mxu1  ;;  %v661_v53 = vadd.f32 %v660_v41, %v596_v40  ;;  %v771_v58 = vadd.f32 %v770_v8, %v700_v49 }
 0x13e   :  { %v820_v0 = vadd.f32 %v819_v10, %v767_v48 }
 0x140   :  { %v848_v3 = vmul.f32 %v820_v0, %v820_v0 }
 0x143   :  { %v729_v50 = vpop.f32.mrf.mxu3 }
 0x144   :  { %v774_v14 = vpop.f32.mrf.mxu0  ;;  %v730_v60 = vadd.f32 %v729_v50, %v661_v53 }
 0x145   :  { %v823_v16 = vpop.f32.mrf.mxu1  ;;  %v775_v54 = vadd.f32 %v774_v14, %v706_v43  ;;  %v1455_v14 = vand.u32 4294901760, %v857_v63 }
 0x146   :  { %v824_v55 = vadd.f32 %v823_v16, %v771_v58 }
 0x148   :  { %v849_v6 = vmul.f32 %v824_v55, %v824_v55 }
 0x14c   :  { %v778_v19 = vpop.f32.mrf.mxu0 }
 0x14d   :  { %v827_v20 = vpop.f32.mrf.mxu1  ;;  %v779_v45 = vadd.f32 %v778_v19, %v712_v30  ;;  %v1466_v19 = vand.u32 4294901760, %v849_v6 }
 0x14e   :  { %v828_v4 = vadd.f32 %v827_v20, %v775_v54 }
 0x14f   :  { %v1490_v36 = vsub.f32 %v849_v6, %v1466_v19 }
 0x150   :  { %v850_v61 = vmul.f32 %v828_v4, %v828_v4 }
 0x151   :  { %v932_v12 = vand.u32 4294901760, %v1490_v36 }
 0x152   :  { %v1457_v16 = vand.u32 4294901760, %v850_v61 }
 0x154   :  { %v782_v26 = vpop.f32.mrf.mxu0  ;;  %v1482_v33 = vsub.f32 %v850_v61, %v1457_v16 }
 0x155   :  { %v831_v32 = vpop.f32.mrf.mxu1  ;;  %v783_v31 = vadd.f32 %v782_v26, %v718_v23  ;;  %v1477_v26 = vsub.f32 %v857_v63, %v1455_v14 }
 0x156   :  { %v832_v56 = vadd.f32 %v831_v32, %v779_v45  ;;  %v1479_v32 = vand.u32 4294901760, %v848_v3  ;;  %v926_v30 = vand.u32 4294901760, %v1482_v33 }
 0x157   :  { %v885_v38 = vand.u32 4294901760, %v1477_v26 }
 0x158   :  { %v851_v29 = vmul.f32 %v832_v56, %v832_v56  ;;  %v1500_v23 = vsub.f32 %v848_v3, %v1479_v32  ;;  %v927_v43 = vsub.f32 %v1482_v33, %v926_v30 }
 0x159   :  { %v886_v41 = vsub.f32 %v1477_v26, %v885_v38 }
 0x15a   :  { %v1450_v8 = vand.u32 4294901760, %v851_v29  ;;  %v938_v45 = vand.u32 4294901760, %v1500_v23  ;;  %v928_v50 = vand.u32 4294901760, %v927_v43 }
 0x15b   :  { %v887_v49 = vand.u32 4294901760, %v886_v41 }
 0x15c   :  { %v786_v37 = vpop.f32.mrf.mxu0  ;;  %v1469_v20 = vsub.f32 %v851_v29, %v1450_v8  ;;  %v939_v53 = vsub.f32 %v1500_v23, %v938_v45 }
 0x15d   :  { %v835_v22 = vpop.f32.mrf.mxu1  ;;  %v787_v42 = vadd.f32 %v786_v37, %v724_v39 }
 0x15e   :  { %v836_v46 = vadd.f32 %v835_v22, %v783_v31  ;;  %v1487_v22 = vand.u32 4294901760, %v847_v18  ;;  %v920_v11 = vand.u32 4294901760, %v1469_v20 }
 0x160   :  { %v852_v27 = vmul.f32 %v836_v46, %v836_v46  ;;  %v943_v31 = vsub.f32 %v847_v18, %v1487_v22  ;;  %v921_v40 = vsub.f32 %v1469_v20, %v920_v11 }
 0x162   :  { %v1448_v2 = vand.u32 4294901760, %v852_v27  ;;  %v922_v46 = vand.u32 4294901760, %v921_v40  ;;  %v944_v47 = vand.u32 4294901760, %v943_v31 }
 0x164   :  { %v790_v59 = vpop.f32.mrf.mxu0  ;;  %v1460_v17 = vsub.f32 %v852_v27, %v1448_v2  ;;  %v945_v56 = vsub.f32 %v943_v31, %v944_v47 }
 0x165   :  { %v839_v52 = vpop.f32.mrf.mxu1  ;;  %v791_v51 = vadd.f32 %v790_v59, %v730_v60 }
 0x166   :  { %v840_v35 = vadd.f32 %v839_v52, %v787_v42  ;;  %v914_v34 = vand.u32 4294901760, %v1460_v17  ;;  %v946_v15 = vand.u32 4294901760, %v945_v56 }
 0x168   :  { %v853_v57 = vmul.f32 %v840_v35, %v840_v35  ;;  %v915_v28 = vsub.f32 %v1460_v17, %v914_v34  ;;  %v933_v35 = vsub.f32 %v1490_v36, %v932_v12 }
 0x16a   :  { %v1446_v1 = vand.u32 4294901760, %v853_v57  ;;  %v916_v52 = vand.u32 4294901760, %v915_v28  ;;  %v934_v54 = vand.u32 4294901760, %v933_v35 }
 0x16c   :  { %v1453_v9 = vsub.f32 %v853_v57, %v1446_v1  ;;  %v940_v57 = vand.u32 4294901760, %v939_v53 }
 0x16d   :  { %v843_v62 = vpop.f32.mrf.mxu1 }
 0x16e   :  { %v844_v5 = vadd.f32 %v843_v62, %v791_v51  ;;  %v908_v25 = vand.u32 4294901760, %v1453_v9 }
 0x170   :  { %v854_v13 = vmul.f32 %v844_v5, %v844_v5  ;;  %v909_v24 = vsub.f32 %v1453_v9, %v908_v25 }
 0x172   :  { %v1462_v10 = vand.u32 4294901760, %v854_v13  ;;  %v910_v42 = vand.u32 4294901760, %v909_v24 }
 0x174   :  { %v1472_v21 = vsub.f32 %v854_v13, %v1462_v10  ;;  %868 = vmatpush.msra.mxu2 %v1462_v10 }
 0x176   :  { %v902_v7 = vand.u32 4294901760, %v1472_v21  ;;  %870 = vmatpush.msra.mxu2 %v1446_v1 }
 0x178   :  { %v903_v37 = vsub.f32 %v1472_v21, %v902_v7  ;;  %872 = vmatpush.msra.mxu2 %v1448_v2 }
 0x17a   :  { %874 = vmatpush.msra.mxu2 %v1450_v8  ;;  %v904_v39 = vand.u32 4294901760, %v903_v37 }
 0x17c   :  { %876 = vmatpush.msra.mxu2 %v1457_v16  ;;  %905 = vmatpush.msra.mxu3 %v904_v39 }
 0x17e   :  { %878 = vmatpush.msra.mxu2 %v1466_v19  ;;  %911 = vmatpush.msra.mxu3 %v910_v42 }
 0x180   :  { %880 = vmatpush.msra.mxu2 %v1479_v32  ;;  %917 = vmatpush.msra.mxu3 %v916_v52 }
 0x182   :  { %882 = vmatpush.msra.mxu2 %v1487_v22  ;;  %923 = vmatpush.msra.mxu3 %v922_v46 }
 0x183   :  { %888 = vmatmul.f32.vlgmr.msra.gmra.mxu2 %v887_v49 }
 0x184   :  { %963 = vmatpush.msrb.mxu2 %v1472_v21  ;;  %929 = vmatpush.msra.mxu3 %v928_v50 }
 0x186   :  { %966 = vmatpush.msrb.mxu2 %v1453_v9  ;;  %935 = vmatpush.msra.mxu3 %v934_v54 }
 0x188   :  { %969 = vmatpush.msrb.mxu2 %v1460_v17  ;;  %941 = vmatpush.msra.mxu3 %v940_v57 }
 0x18a   :  { %972 = vmatpush.msrb.mxu2 %v1469_v20  ;;  %947 = vmatpush.msra.mxu3 %v946_v15 }
 0x18b   :  { %949 = vmatmul.f32.vlgmr.msra.gmra.mxu3 %v1455_v14 }
 0x18c   :  { %975 = vmatpush.msrb.mxu2 %v1482_v33  ;;  %1000 = vmatpush.msrb.mxu3 %v1462_v10 }
 0x18e   :  { %978 = vmatpush.msrb.mxu2 %v1490_v36  ;;  %1002 = vmatpush.msrb.mxu3 %v1446_v1 }
 0x190   :  { %981 = vmatpush.msrb.mxu2 %v1500_v23  ;;  %1004 = vmatpush.msrb.mxu3 %v1448_v2 }
 0x192   :  { %984 = vmatpush.msrb.mxu2 %v943_v31  ;;  %1006 = vmatpush.msrb.mxu3 %v1450_v8 }
 0x193   :  { %987 = vmatmul.f32.vlgmr.msrb.gmra.mxu2 %v1477_v26 }
 0x194   :  { %1033 = vmatpush.msra.mxu2 %v902_v7  ;;  %1008 = vmatpush.msrb.mxu3 %v1457_v16 }
 0x196   :  { %1037 = vmatpush.msra.mxu2 %v908_v25  ;;  %1010 = vmatpush.msrb.mxu3 %v1466_v19 }
 0x198   :  { %1041 = vmatpush.msra.mxu2 %v914_v34  ;;  %1012 = vmatpush.msrb.mxu3 %v1479_v32 }
 0x19a   :  { %1045 = vmatpush.msra.mxu2 %v920_v11  ;;  %1014 = vmatpush.msrb.mxu3 %v1487_v22 }
 0x19b   :  { %1018 = vmatmul.f32.vlgmr.msrb.gmra.mxu3 %v885_v38 }
 0x19c   :  { %1049 = vmatpush.msra.mxu2 %v926_v30  ;;  %1076 = vmatpush.msra.mxu3 %v1462_v10 }
 0x19e   :  { %1053 = vmatpush.msra.mxu2 %v932_v12  ;;  %1078 = vmatpush.msra.mxu3 %v1446_v1 }
 0x1a0   :  { %1057 = vmatpush.msra.mxu2 %v938_v45  ;;  %1080 = vmatpush.msra.mxu3 %v1448_v2 }
 0x1a2   :  { %1061 = vmatpush.msra.mxu2 %v944_v47  ;;  %1082 = vmatpush.msra.mxu3 %v1450_v8 }
 0x1a3   :  { %1063 = vmatmul.f32.vlgmr.msra.gmra.mxu2 %v1455_v14 }
 0x1a4   :  { %1084 = vmatpush.msra.mxu3 %v1457_v16 }
 0x1a6   :  { %1086 = vmatpush.msra.mxu3 %v1466_v19 }
 0x1a8   :  { %1088 = vmatpush.msra.mxu3 %v1479_v32 }
 0x1aa   :  { %1090 = vmatpush.msra.mxu3 %v1487_v22 }
 0x1ab   :  { %1092 = vmatmul.f32.vlgmr.msra.gmra.mxu3 %v1455_v14 }
 0x206   :  { %v889_v58 = vpop.f32.mrf.mxu2 }
 0x20e   :  { %v950_v59 = vpop.f32.mrf.mxu3 }
 0x20f   :  { %v951_v4 = vadd.f32 %v950_v59, %v889_v58 }
 0x216   :  { %v988_v60 = vpop.f32.mrf.mxu2 }
 0x217   :  { %v989_v44 = vadd.f32 %v988_v60, %v951_v4 }
 0x21e   :  { %v1019_v27 = vpop.f32.mrf.mxu3 }
 0x21f   :  { %v1020_v48 = vadd.f32 %v1019_v27, %v989_v44 }
 0x226   :  { %v1064_v55 = vpop.f32.mrf.mxu2 }
 0x227   :  { %v1065_v29 = vadd.f32 %v1064_v55, %v1020_v48 }
 0x22e   :  { %v1093_v51 = vpop.f32.mrf.mxu3 }
 0x22f   :  { %v1094_v1 = vadd.f32 %v1093_v51, %v1065_v29 }
 0x231   :  { %1096 = vst [vmem:[#allocation2] sm:$0xff] %v1094_v1 }
 0x232   :  { %1107 = dma.vmem_to_hbm [thread:$0]  %s1103_s30, 128, %s1105_s6, [#allocation3]  }
 0x233   :  { %1159 = dma.done.wait [#allocation3], 128  }
 0x234   :  { %1160 = vsyncadd [#allocation3], 4294967168 }
 0x235   :  { %1112 = vsyncpa [#allocation3], 1 }

</bundles_post_ra>
